<compile_context>
chip_gen: v7x
topology: tpu7x:2x2x1
jax: 0.10.0
libtpu: 0.0.40
codegen_flags: <defaults>
</compile_context>

<pallas_src>
import functools

import jax
import jax.numpy as jnp
from jax.experimental import pallas as pl
from jax.experimental.pallas import tpu as pltpu


_VMEM_LIMIT = 48 * 1024 * 1024


def _round_up(x, m):
    return ((x + m - 1) // m) * m


# ----------------------------------------------------------------------------
# Pallas kernels
# ----------------------------------------------------------------------------
def conv_mm_kernel(p_ref, w_ref, b_ref, *out_refs,
                   use_bias, use_norm, use_lrelu, vpu_path, slope):
    """Pass 1: conv tile as matmul (or VPU reduce for Cout==1) + bias
    (+ per-(sample,channel) sum/sumsq accumulation for InstanceNorm)
    (+ LeakyReLU when no norm follows).

    p_ref : (1, K, TP)      im2col patches, transposed (K on sublanes, P on lanes)
    w_ref : (Cout, K)       weight  (VPU path: (K, 1) f32)
    b_ref : (Cout, 1)       f32 bias (zeros when unused)
    out_refs[0] : (1, Cout, TP) f32   conv output tile
    out_refs[1] : (1, Cout, 1)  f32   running sum   (norm layers only)
    out_refs[2] : (1, Cout, 1)  f32   running sumsq (norm layers only)
    """
    y_ref = out_refs[0]
    x = p_ref[0]                                           # (K, TP)
    if vpu_path:
        # Cout == 1: VPU multiply + sublane reduce instead of a 1-wide MXU matmul.
        y = jnp.sum(x.astype(jnp.float32) * w_ref[...], axis=0, keepdims=True)
    else:
        y = jnp.dot(w_ref[...], x, preferred_element_type=jnp.float32)  # (Cout, TP)
    if use_bias:
        y = y + b_ref[...]                                 # (Cout, 1) broadcast over lanes
    if use_norm:
        sum_ref, sq_ref = out_refs[1], out_refs[2]
        s = jnp.sum(y, axis=1, keepdims=True)[None]        # (1, Cout, 1)
        sq = jnp.sum(y * y, axis=1, keepdims=True)[None]   # (1, Cout, 1)

        @pl.when(pl.program_id(1) == 0)
        def _init():
            sum_ref[...] = jnp.zeros_like(sum_ref)
            sq_ref[...] = jnp.zeros_like(sq_ref)

        sum_ref[...] += s
        sq_ref[...] += sq
    if use_lrelu and not use_norm:
        y = jnp.where(y >= 0, y, slope * y)
    y_ref[0] = y.astype(y_ref.dtype)


def norm_act_kernel(y_ref, sc_ref, sh_ref, o_ref, *, use_lrelu, slope):
    """Pass 2: per-(sample,channel) affine (InstanceNorm) + LeakyReLU."""
    y = y_ref[0] * sc_ref[0] + sh_ref[0]                   # (Cout, TP)
    if use_lrelu:
        y = jnp.where(y >= 0, y, slope * y)
    o_ref[0] = y


def avg_pool_kernel(pee_ref, peo_ref, poe_ref, poo_ref, inv_ref, o_ref, *, ho, wo):
    """avg_pool2d(k=3, s=2, p=1, count_include_pad=False) from 4 parity planes."""
    planes = ((pee_ref[0], peo_ref[0]),
              (poe_ref[0], poo_ref[0]))                    # [row parity][col parity]
    acc = None
    for i in range(3):
        rp, ro = i % 2, i // 2
        for j in range(3):
            cp, co = j % 2, j // 2
            tap = planes[rp][cp][:, ro:ro + ho, co:co + wo]
            acc = tap if acc is None else acc + tap
    o_ref[0] = acc * inv_ref[0]


# ----------------------------------------------------------------------------
# Glue: im2col (transposed), conv wrapper, avg-pool wrapper
# ----------------------------------------------------------------------------
def _im2col_T(x, kh, kw, stride, pad):
    """x: (N, Cin, H, W) -> transposed patches (N, K, P), K order = (ci, kh, kw)."""
    # TODO(synk): this still materializes kh*kw shifted copies in HBM; the next step
    # is in-kernel tap accumulation from parity planes of the padded input.
    n, c, h, w = x.shape
    xp = jnp.pad(x, ((0, 0), (0, 0), (pad, pad), (pad, pad)))
    ho = (h + 2 * pad - kh) // stride + 1
    wo = (w + 2 * pad - kw) // stride + 1
    taps = []
    for i in range(kh):
        for j in range(kw):
            taps.append(xp[:, :, i:i + stride * (ho - 1) + 1:stride,
                               j:j + stride * (wo - 1) + 1:stride])
    pat = jnp.stack(taps, axis=2)                    # (N, C, kh*kw, Ho, Wo)
    pat = pat.reshape(n, c * kh * kw, ho * wo)       # contiguous reshape, no transpose
    return pat, ho, wo


def conv_block(x, w, b, stride, pad, use_norm, use_lrelu, *,
               tile_p=512, compute_dtype=jnp.bfloat16, eps=1e-5, slope=0.2):
    """Conv2d (+InstanceNorm2d) (+LeakyReLU) via Pallas; NCHW in, NCHW out."""
    assert tile_p % 128 == 0
    n = x.shape[0]
    cout, cin, kh, kw = w.shape
    k_dim = cin * kh * kw

    patches, ho, wo = _im2col_T(x, kh, kw, stride, pad)    # (N, K, P) f32
    p_real = ho * wo
    tp = min(tile_p, _round_up(p_real, 128))
    pp = _round_up(p_real, tp)
    num_pt = pp // tp
    patches = jnp.pad(patches, ((0, 0), (0, 0), (0, pp - p_real)))
    patches = patches.astype(compute_dtype)

    vpu_path = (cout == 1)
    if vpu_path:
        w_mat = w.reshape(k_dim, 1).astype(jnp.float32)    # VPU weighted-sum weights
    else:
        w_mat = w.reshape(cout, k_dim).astype(compute_dtype)
    use_bias = b is not None
    b_arr = (b if use_bias else jnp.zeros((cout,), jnp.float32))
    b_arr = b_arr.reshape(cout, 1).astype(jnp.float32)

    kern = functools.partial(conv_mm_kernel, use_bias=use_bias, use_norm=use_norm,
                             use_lrelu=use_lrelu, vpu_path=vpu_path, slope=slope)

    y_spec = pl.BlockSpec((1, cout, tp), lambda i, j: (i, 0, j))
    if use_norm:
        stat_struct = jax.ShapeDtypeStruct((n, cout, 1), jnp.float32)
        stat_spec = pl.BlockSpec((1, cout, 1), lambda i, j: (i, 0, 0))
        out_shape = (jax.ShapeDtypeStruct((n, cout, pp), jnp.float32),
                     stat_struct, stat_struct)
        out_specs = (y_spec, stat_spec, stat_spec)
    else:
        out_shape = jax.ShapeDtypeStruct((n, cout, pp), jnp.float32)
        out_specs = y_spec

    res = pl.pallas_call(
        kern,
        out_shape=out_shape,
        grid=(n, num_pt),
        in_specs=[
            pl.BlockSpec((1, k_dim, tp), lambda i, j: (i, 0, j)),
            pl.BlockSpec(w_mat.shape, lambda i, j: (0, 0)),
            pl.BlockSpec((cout, 1), lambda i, j: (0, 0)),
        ],
        out_specs=out_specs,
        compiler_params=pltpu.CompilerParams(
            dimension_semantics=("parallel", "arbitrary" if use_norm else "parallel"),
            vmem_limit_bytes=_VMEM_LIMIT),
    )(patches, w_mat, b_arr)

    if use_norm:
        y, ssum, ssq = res
        mean = ssum[:, :, 0] / float(p_real)                          # (N, Cout)
        var = jnp.maximum(ssq[:, :, 0] / float(p_real) - mean * mean, 0.0)
        invstd = jax.lax.rsqrt(var + eps)
        scale = invstd.reshape(n, cout, 1)
        shift = (-mean * invstd).reshape(n, cout, 1)
        y = pl.pallas_call(
            functools.partial(norm_act_kernel, use_lrelu=use_lrelu, slope=slope),
            out_shape=jax.ShapeDtypeStruct((n, cout, pp), jnp.float32),
            grid=(n, num_pt),
            in_specs=[
                y_spec,
                pl.BlockSpec((1, cout, 1), lambda i, j: (i, 0, 0)),
                pl.BlockSpec((1, cout, 1), lambda i, j: (i, 0, 0)),
            ],
            out_specs=y_spec,
            compiler_params=pltpu.CompilerParams(
                dimension_semantics=("parallel", "parallel"),
                vmem_limit_bytes=_VMEM_LIMIT),
        )(y, scale, shift)
    else:
        y = res

    # (N, Cout, Pp) -> NCHW: slice off lane padding; no transpose needed.
    return y[:, :, :p_real].reshape(n, cout, ho, wo)


def avg_pool_3x3_s2(x):
    """F.avg_pool2d(x, 3, stride=2, padding=1, count_include_pad=False)."""
    n, c, h, w = x.shape
    xp = jnp.pad(x, ((0, 0), (0, 0), (1, 1), (1, 1)))
    ho = (h - 1) // 2 + 1
    wo = (w - 1) // 2 + 1
    # 4 parity planes: together exactly one copy of the padded tensor (no 9x blow-up).
    pee = xp[:, :, 0::2, 0::2]
    peo = xp[:, :, 0::2, 1::2]
    poe = xp[:, :, 1::2, 0::2]
    poo = xp[:, :, 1::2, 1::2]
    # number of non-pad elements per window -> reciprocal (multiply, don't divide).
    onep = jnp.pad(jnp.ones((1, 1, h, w), jnp.float32), ((0, 0), (0, 0), (1, 1), (1, 1)))
    cnt = sum(onep[:, :, i:i + 2 * (ho - 1) + 1:2, j:j + 2 * (wo - 1) + 1:2]
              for i in range(3) for j in range(3))
    inv_cnt = 1.0 / cnt                                    # (1, 1, Ho, Wo)

    return pl.pallas_call(
        functools.partial(avg_pool_kernel, ho=ho, wo=wo),
        out_shape=jax.ShapeDtypeStruct((n, c, ho, wo), jnp.float32),
        grid=(n,),
        in_specs=[
            pl.BlockSpec((1, c) + pee.shape[2:], lambda i: (i, 0, 0, 0)),
            pl.BlockSpec((1, c) + peo.shape[2:], lambda i: (i, 0, 0, 0)),
            pl.BlockSpec((1, c) + poe.shape[2:], lambda i: (i, 0, 0, 0)),
            pl.BlockSpec((1, c) + poo.shape[2:], lambda i: (i, 0, 0, 0)),
            pl.BlockSpec((1, 1, ho, wo), lambda i: (0, 0, 0, 0)),
        ],
        out_specs=pl.BlockSpec((1, c, ho, wo), lambda i: (i, 0, 0, 0)),
        compiler_params=pltpu.CompilerParams(
            dimension_semantics=("parallel",),
            vmem_limit_bytes=_VMEM_LIMIT),
    )(pee, peo, poe, poo, inv_cnt)


# ----------------------------------------------------------------------------
# Parameter construction (deterministic, synthetic)
# ----------------------------------------------------------------------------
class Opt:
    nc_discriminator = 16
    n_layers_discriminator = 3
    num_discriminator = 2
    norm_discriminator = "spectralinstance"   # spectral_norm(conv) + InstanceNorm2d


def _spectral_normalize(w, n_iters=10):
    """Divide conv weight by its spectral norm (power iteration on (Cout, K) matrix).
    # TODO(synk): PyTorch spectral_norm keeps a persistent power-iteration state
    # (one step per forward); here we use a converged estimate for synthetic weights.
    """
    cout = w.shape[0]
    w_mat = w.reshape(cout, -1)
    u = jnp.full((cout,), 1.0 / jnp.sqrt(cout), jnp.float32)
    for _ in range(n_iters):
        v = w_mat.T @ u
        v = v / (jnp.linalg.norm(v) + 1e-12)
        u = w_mat @ v
        u = u / (jnp.linalg.norm(u) + 1e-12)
    sigma = u @ (w_mat @ v)
    return w / sigma


def init_nlayer_params(key, opt):
    """Mirrors NLayerDiscriminator.__init__ layer shapes (kw=4, padw=2)."""
    kw, padw = 4, 2
    nf = opt.nc_discriminator
    input_nc = 3
    keys = jax.random.split(key, opt.n_layers_discriminator + 1)
    layers = []
    # model0: Conv(3->nf, s2) + LeakyReLU(0.2)
    w0 = 0.02 * jax.random.normal(keys[0], (nf, input_nc, kw, kw), jnp.float32)
    layers.append(dict(w=w0, b=jnp.zeros((nf,), jnp.float32),
                       stride=2, pad=padw, norm=False, lrelu=True))
    # model1..n-1: spectral_norm(Conv, no bias) + InstanceNorm2d + LeakyReLU
    for li in range(1, opt.n_layers_discriminator):
        nf_prev, nf = nf, min(nf * 2, 512)
        stride = 1 if li == opt.n_layers_discriminator - 1 else 2
        wgt = 0.02 * jax.random.normal(keys[li], (nf, nf_prev, kw, kw), jnp.float32)
        wgt = _spectral_normalize(wgt)
        layers.append(dict(w=wgt, b=None,
                           stride=stride, pad=padw, norm=True, lrelu=True))
    # final: Conv(nf->1, s1), no activation
    wl = 0.02 * jax.random.normal(keys[-1], (1, nf, kw, kw), jnp.float32)
    layers.append(dict(w=wl, b=jnp.zeros((1,), jnp.float32),
                       stride=1, pad=padw, norm=False, lrelu=False))
    return layers


# ----------------------------------------------------------------------------
# Forward passes
# ----------------------------------------------------------------------------
def nlayer_forward(layers, x, *, tile_p, compute_dtype):
    """Returns the list of all intermediate outputs (results[1:] in PyTorch)."""
    results = []
    for layer in layers:
        x = conv_block(x, layer["w"], layer["b"], layer["stride"], layer["pad"],
                       layer["norm"], layer["lrelu"],
                       tile_p=tile_p, compute_dtype=compute_dtype)
        results.append(x)
    return results


def multiscale_forward(all_disc_params, x, *, tile_p=512, compute_dtype=jnp.bfloat16):
    result = []
    for layers in all_disc_params:
        result.append(nlayer_forward(layers, x, tile_p=tile_p,
                                     compute_dtype=compute_dtype))
        x = avg_pool_3x3_s2(x)
    return result


# ----------------------------------------------------------------------------
# Pure-JAX reference (for a correctness cross-check)
# ----------------------------------------------------------------------------
def _conv_ref(x, w, b, stride, pad):
    out = jax.lax.conv_general_dilated(
        x, w, window_strides=(stride, stride),
        padding=[(pad, pad), (pad, pad)],
        dimension_numbers=("NCHW", "OIHW", "NCHW"),
        precision=jax.lax.Precision.HIGHEST)
    if b is not None:
        out = out + b.reshape(1, -1, 1, 1)
    return out


def _instnorm_ref(x, eps=1e-5):
    mean = x.mean(axis=(2, 3), keepdims=True)
    var = ((x - mean) ** 2).mean(axis=(2, 3), keepdims=True)
    return (x - mean) * jax.lax.rsqrt(var + eps)


def _lrelu_ref(x, slope=0.2):
    return jnp.where(x >= 0, x, slope * x)


def _avg_pool_ref(x):
    n, c, h, w = x.shape
    xp = jnp.pad(x, ((0, 0), (0, 0), (1, 1), (1, 1)))
    onep = jnp.pad(jnp.ones((1, 1, h, w), x.dtype), ((0, 0), (0, 0), (1, 1), (1, 1)))
    ho = (h - 1) // 2 + 1
    wo = (w - 1) // 2 + 1
    s = sum(xp[:, :, i:i + 2 * (ho - 1) + 1:2, j:j + 2 * (wo - 1) + 1:2]
            for i in range(3) for j in range(3))
    cnt = sum(onep[:, :, i:i + 2 * (ho - 1) + 1:2, j:j + 2 * (wo - 1) + 1:2]
              for i in range(3) for j in range(3))
    return s / cnt


def multiscale_ref(all_params, x):
    result = []
    for layers in all_params:
        outs = []
        h = x
        for layer in layers:
            h = _conv_ref(h, layer["w"], layer["b"], layer["stride"], layer["pad"])
            if layer["norm"]:
                h = _instnorm_ref(h)
            if layer["lrelu"]:
                h = _lrelu_ref(h)
            outs.append(h)
        result.append(outs)
        x = _avg_pool_ref(x)
    return result


# ----------------------------------------------------------------------------
# Main
# ----------------------------------------------------------------------------
if __name__ == "__main__":
    opt = Opt()
    key = jax.random.PRNGKey(0)
    k_in, k_params = jax.random.split(key)

    # NLayerDiscriminator hard-codes input_nc = 3.  64x64 is still small but large
    # enough to exercise the P-tiling / cross-tile InstanceNorm accumulation path.
    x = jax.random.normal(k_in, (2, 3, 64, 64), jnp.float32)

    disc_keys = jax.random.split(k_params, opt.num_discriminator)
    all_params = [init_nlayer_params(disc_keys[i], opt)
                  for i in range(opt.num_discriminator)]

    # Correctness cross-check: f32 compute, small P tiles (multi-tile norm path).
    res_check = multiscale_forward(all_params, x, tile_p=128,
                                   compute_dtype=jnp.float32)
    res_ref = multiscale_ref(all_params, x)
    for d_out, d_ref in zip(res_check, res_ref):
        for a, b in zip(d_out, d_ref):
            assert a.shape == b.shape, (a.shape, b.shape)
            err = float(jnp.max(jnp.abs(a - b)))
            assert err < 0.1, f"mismatch vs reference: max abs err {err}"

    # Performance configuration: bf16 MXU inputs, larger P tiles.
    result = multiscale_forward(all_params, x, tile_p=512,
                                compute_dtype=jnp.bfloat16)
    jax.block_until_ready(result)

    # sanity: num_discriminator lists, each with n_layers+1 feature maps
    assert len(result) == opt.num_discriminator
    assert all(len(r) == opt.n_layers_discriminator + 1 for r in result)
    print("KERNEL_OK")
</pallas_src>

<mosaic_0001>
module attributes {stable_mosaic.version = 11 : i64} {
  func.func @conv_mm_kernel(%arg0: i32, %arg1: i32, %arg2: memref<1x48x128xf32, #tpu.memory_space<vmem>>, %arg3: memref<16x48xf32, #tpu.memory_space<vmem>>, %arg4: memref<16x1xf32, #tpu.memory_space<vmem>>, %arg5: memref<1x16x128xf32, #tpu.memory_space<vmem>>) attributes {dimension_semantics = [#tpu.dimension_semantics<parallel>, #tpu.dimension_semantics<parallel>], iteration_bounds = array<i64: 2, 9>, scalar_prefetch = 0 : i64, scratch_operands = 0 : i64, tpu.core_type = #tpu.core_type<tc>, window_params = [{transform_indices = @transform_0, window_bounds = array<i64: 1, 48, 128>}, {pipeline_mode = #tpu.pipeline_mode<synchronous>, transform_indices = @transform_1, window_bounds = array<i64: 16, 48>}, {pipeline_mode = #tpu.pipeline_mode<synchronous>, transform_indices = @transform_2, window_bounds = array<i64: 16, 1>}, {transform_indices = @transform_3, window_bounds = array<i64: 1, 16, 128>}]} {
    %c0 = arith.constant 0 : index
    %c0_0 = arith.constant 0 : index
    %c0_1 = arith.constant 0 : index
    %0 = vector.load %arg2[%c0, %c0_0, %c0_1] : memref<1x48x128xf32, #tpu.memory_space<vmem>>, vector<1x48x128xf32>
    %1 = vector.shape_cast %0 : vector<1x48x128xf32> to vector<48x128xf32>
    %c0_2 = arith.constant 0 : index
    %c0_3 = arith.constant 0 : index
    %2 = vector.load %arg3[%c0_2, %c0_3] : memref<16x48xf32, #tpu.memory_space<vmem>>, vector<16x48xf32>
    %cst = arith.constant dense<0.000000e+00> : vector<16x128xf32>
    %3 = tpu.matmul %2, %1, %cst {dimension_numbers = #tpu.dot_dimension_numbers<[1], [0], [0], [1], [0, 0, 1, 1], [], []>} : vector<16x48xf32>, vector<48x128xf32>, vector<16x128xf32> -> vector<16x128xf32>
    %c0_4 = arith.constant 0 : index
    %c0_5 = arith.constant 0 : index
    %4 = vector.load %arg4[%c0_4, %c0_5] : memref<16x1xf32, #tpu.memory_space<vmem>>, vector<16x1xf32>
    %5 = vector.broadcast %4 : vector<16x1xf32> to vector<16x128xf32>
    %6 = arith.addf %3, %5 : vector<16x128xf32>
    %cst_6 = arith.constant 0.000000e+00 : f32
    %7 = vector.broadcast %cst_6 : f32 to vector<16x128xf32>
    %8 = arith.cmpf oge, %6, %7 : vector<16x128xf32>
    %cst_7 = arith.constant 2.000000e-01 : f32
    %9 = vector.broadcast %cst_7 : f32 to vector<16x128xf32>
    %10 = arith.mulf %9, %6 : vector<16x128xf32>
    %11 = arith.select %8, %6, %10 : vector<16x128xi1>, vector<16x128xf32>
    %c0_8 = arith.constant 0 : index
    %c0_9 = arith.constant 0 : index
    %c0_10 = arith.constant 0 : index
    %12 = vector.load %arg5[%c0_8, %c0_9, %c0_10] : memref<1x16x128xf32, #tpu.memory_space<vmem>>, vector<1x16x128xf32>
    %13 = vector.shape_cast %12 : vector<1x16x128xf32> to vector<16x128xf32>
    %14 = vector.shape_cast %11 : vector<16x128xf32> to vector<1x16x128xf32>
    tpu.vector_store %arg5[%c0_8, %c0_9, %c0_10], %14 {strides = array<i32>} : memref<1x16x128xf32, #tpu.memory_space<vmem>>, vector<1x16x128xf32>,
    return
  }
  func.func @transform_0(%arg0: i32, %arg1: i32) -> (i32, i32, i32) {
    %c0_i32 = arith.constant 0 : i32
    %c0_i32_0 = arith.constant 0 : i32
    return %arg0, %c0_i32, %arg1 : i32, i32, i32
  }
  func.func @transform_1(%arg0: i32, %arg1: i32) -> (i32, i32) {
    %c0_i32 = arith.constant 0 : i32
    %c0_i32_0 = arith.constant 0 : i32
    %c0_i32_1 = arith.constant 0 : i32
    return %c0_i32, %c0_i32_0 : i32, i32
  }
  func.func @transform_2(%arg0: i32, %arg1: i32) -> (i32, i32) {
    %c0_i32 = arith.constant 0 : i32
    %c0_i32_0 = arith.constant 0 : i32
    %c0_i32_1 = arith.constant 0 : i32
    return %c0_i32, %c0_i32_0 : i32, i32
  }
  func.func @transform_3(%arg0: i32, %arg1: i32) -> (i32, i32, i32) {
    %c0_i32 = arith.constant 0 : i32
    %c0_i32_0 = arith.constant 0 : i32
    return %arg0, %c0_i32, %arg1 : i32, i32, i32
  }
}

</mosaic_0001>

<bundles_post_ra>
// kernel: tpu_custom_call.1
= control target key start
LH: loop header
LB: loop body
LE: loop exit
PB: predicated region body
PF: predicated region fallthrough
CT: control target
= control target key end

     0   :  { %8 = vsyncpa [#allocation3], 0  ;;  %s926_s0 = inlined_call_operand.hbm [shape: f32[2,48,1152], index: 0, kind: input, shape index: {}]   ;;  %s927_s1 = inlined_call_operand.vmem [shape: f32[16,48], index: 1, kind: input, shape index: {}]   ;;  %s928_s2 = inlined_call_operand.vmem [shape: f32[16,1], index: 2, kind: input, shape index: {}]   ;;  %s929_s3 = inlined_call_operand.hbm [shape: f32[2,16,1152], index: 3, kind: output, shape index: {}]  }
   0x1   :  { %10 = vsyncpa [#allocation3 + $0x1], 0 }
   0x2   :  { %11 = vsyncpa [#allocation4], 0 }
   0x3   :  { %13 = vsyncpa [#allocation4 + $0x1], 0  ;;  %s716_s12 = smov 0   ;;  %s718_s13 = smov 0  }
   0x4   :  { %s720_s14 = smov 0   ;;  %s722_s15 = smov 0  }
   0x5   :  { %s724_s16 = smov 0   ;;  %s726_s17 = smov 0  }
   0x6   :  { %s728_s18 = smov 0   ;;  %s730_s19 = smov 0  }
   0x7 LB: > { %s419_s20 = sadd.s32 4294967295, %s685_s19   ;;  %s420_s21 = sadd.s32 4294967294, %s685_s19   ;;  %s685_s19 = sphi %s730_s19, %s19_s19   ;;  %s681_s18 = sphi %s728_s18, %s944_s18   ;;  %s677_s17 = sphi %s726_s17, %s943_s17   ;;  %s673_s16 = sphi %s724_s16, %s942_s16   ;;  %s669_s15 = sphi %s722_s15, %s941_s15   ;;  %s665_s14 = sphi %s720_s14, %s940_s14   ;;  %s661_s13 = sphi %s718_s13, %s939_s13   ;;  %s657_s12 = sphi %s716_s12, %s938_s12  }
   0x8   : > { %s28_s22 = sadd.s32 1, %s677_s17  ;;  %s31_s23 = sadd.s32 1, %s681_s18 }
   0x9   : > { %p29_p0 = scmp.ge.s32.totalorder %s28_s22, 9  ;;  %s40_s24 = sadd.s32 1, %s665_s14 }
   0xa   : > { %p47_p1 = scmp.ne.s32.totalorder %s665_s14, %s661_s13  ;;  %p48_p2 = scmp.eq.s32.totalorder %s685_s19, 0 }
   0xb   : > { %s946_s22 = smov (%p29_p0, %s28_s22), 0  ;;  %s948_s23 = smov (!%p29_p0, %s31_s23), %s681_s18 }
   0xc   : > { %s36_s25 = ssub.s32 %s677_s17, %s946_s22  ;;  %p769_p3 = por %p48_p2, %p47_p1 }
   0xd   : > { %p33_p4 = scmp.ge.s32.totalorder %s948_s23, 2  ;;  %p53_p5 = scmp.ne.s32.totalorder %s661_s13, %s657_s12 }
   0xe   : > { %p54_p6 = scmp.eq.s32.totalorder %s419_s20, 0  ;;  %p121_p7 = scmp.eq.s32.totalorder %s419_s20, 17 }
   0xf   : > { %s950_s23 = smov (%p33_p4, %s948_s23), 0  ;;  %p127_p10 = scmp.eq.s32.totalorder %s420_s21, 17 }
  0x10   : > { %p777_p8 = por %p54_p6, %p53_p5  ;;  %p781_p9 = por %p121_p7, %p47_p1 }
  0x11   : > { %s35_s29 = ssub.s32 %s681_s18, %s950_s23  ;;  %p787_p12 = por %p127_p10, %p53_p5 }
  0x12   : > { %s933_s28 = scalar_select %p781_p9, 1, 0 }
  0x13   : > { %s37_s30 = sor.u32 %s36_s25, %s35_s29  ;;  %p483_p13 = scmp.lt.s32.totalorder %s685_s19, 18 }
  0x14   : > { %p38_p11 = scmp.eq.s32.totalorder %s37_s30, 0  ;;  %s153_s5 = sand.u32 1, %s665_s14  }
  0x15   : > { %s934_s4 = scalar_select %p787_p12, 1, 0 }
  0x16   : > { %s794_s6 = scalar_select %p38_p11, %s665_s14, %s40_s24  }
  0x17   : > { %s467_s7 = smul.u32 48, %s153_s5  ;;  %p799_p0 = pnand %p483_p13, %p769_p3 }
  0x18   : > { %s468_s8 = smul.u32 54, %s681_s18  ;;  %s811_s26 = scalar_lea.sflag [#allocation3], %s153_s5 }
  0x19   : > { %s157_s11 = scalar_lea.vmem [#allocation2], %s467_s7  ;;  %p559_p2 = pneg %p799_p0 }
  0x1a   : > { %s162_s10 = sadd.s32 %s677_s17, %s468_s8  ;;  %s165_s20 = sshll.u32 %s157_s11, 4  ;;  %s804_s20 = int_to_ptr.vmem [resolvable:$true] %s165_s20 }
  0x1b   : > { %s423_s21 = sshll.u32 %s162_s10, 7  ;;  %s562_s10 = scalar_lea.hbm %s926_s0, 13824 }
  0x1c   : > { %s809_s24 = scalar_lea.hbm %s926_s0, %s423_s21 }
  0x1d   : > { %s557_s30 = scalar_lea.hbm %s809_s24, 768  ;;  %p563_p5 = scmp.lt.u32.totalorder %s809_s24, %s926_s0 }
  0x1e   : > { %p558_p1 = scmp.ne.s32.totalorder %s809_s24, %s557_s30  ;;  %p564_p6 = scmp.lt.u32.totalorder %s562_s10, %s557_s30 }
  0x1f   : > { %p566_p10 = scmp.lt.u32.totalorder %s557_s30, %s809_s24 }
  0x20   : > { %p560_p3 = pnand %p559_p2, %p558_p1  ;;  %p565_p7 = por %p564_p6, %p563_p5 }
  0x22   : > { %p561_p4 = pneg %p560_p3  ;;  %p567_p11 = por %p566_p10, %p565_p7 }
  0x24   : > { %p568_p13 = pnand %p567_p11, %p561_p4 }
  0x26   : > { %571 = shalt.err (!%p568_p13)
}
  0x27   : > { %s572_s5 = scalar_lea.vmem %s804_s20, 768  ;;  %s687_s25 = smov [#allocation2]  }
  0x28   : > { %p573_p1 = scmp.ne.s32.totalorder %s804_s20, %s572_s5  ;;  %s577_s29 = sshll.u32 %s687_s25, 4  ;;  %s578_s29 = int_to_ptr.vmem [resolvable:$false] %s577_s29 }
  0x29   : > { %s579_s7 = scalar_lea.vmem %s578_s29, 1536  ;;  %p580_p9 = scmp.lt.s32.totalorder %s804_s20, %s578_s29 }
  0x2a   : > { %p575_p3 = pnand %p573_p1, %p559_p2  ;;  %p581_p5 = scmp.lt.s32.totalorder %s579_s7, %s572_s5 }
  0x2c   : > { %p576_p12 = pneg %p575_p3  ;;  %p582_p6 = por %p581_p5, %p580_p9 }
  0x2e   : > { %p583_p7 = pnand %p582_p6, %p576_p12 }
  0x30   : > { %586 = shalt.err (!%p583_p7)
}
  0x31   : > { %s688_s30 = smov 1152   ;;  %s689_s8 = smov 128  }
  0x32   : > { %s690_s10 = smov 8   ;;  %p424_p2 = scmp.ge.s32.totalorder %s685_s19, 1 }
  0x33   : > { %478 = dma.hbm_to_vmem [thread:$0]  (!%p799_p0), %s809_s24, 768, %s804_s20, %s811_s26, %s688_s30, %s689_s8, %s690_s10  }
  0x34   : > { %p173_p4 = scmp.lt.s32.totalorder %s685_s19, 19 }
  0x36   : > { %p174_p10 = pnand %p424_p2, %p173_p4 }
  0x37   : > { %s842_s11 = sand.u32 (!%p174_p10), 1, %s661_s13  }
  0x38   : > { %177 = sbr.rel (%p174_p10) target bundleno = 313 (0x139), region = 32  ;;  %s180_s5 = scalar_lea.sflag (!%p174_p10), [#allocation3], %s842_s11 }
  0x39   : > { %s469_s21 = smul.u32 (!%p174_p10), 48, %s842_s11 }
  0x3b   : > { %s183_s25 = scalar_lea.vmem (!%p174_p10), [#allocation2], %s469_s21 }
  0x3f   : > { %648 = dma.done.wait (%p777_p8), %s180_s5, 768  }
  0x40   : > { %650 = vsyncadd (%p777_p8), %s180_s5, 4294966528  ;;  %v691_v0 = vmov 0   ;;  %v206_v1 = vld [vmem:[%s183_s25] sm:$0xff]  ;;  %v207_v2 = vld [vmem:[%s183_s25 + $0x8] sm:$0xff]  ;;  %vm226_vm0 = vcmask 392192   ;;  %s425_s8 = sshll.u32 %s842_s11, 4 }
  0x41   : > { %556 = vset.pattern.permute.xlu0 %v691_v0  ;;  %v208_v3 = vld [vmem:[%s183_s25 + $0x10] sm:$0xff]  ;;  %v455_v4 = vpack.c.bf16 %v207_v2, %v206_v1  ;;  %v209_v5 = vld [vmem:[%s183_s25 + $0x18] sm:$0xff]  ;;  %v210_v6 = vld [vmem:[%s183_s25 + $0x20] sm:$0xff]  ;;  %s470_s10 = smul.u32 18, %s673_s16  ;;  %s205_s5 = scalar_lea.vmem [#allocation5], %s425_s8 }
  0x42   : > { %v459_v7 = vpack.c.bf16 %v209_v5, %v208_v3  ;;  %v211_v8 = vld [vmem:[%s183_s25 + $0x28] sm:$0xff]  ;;  %v212_v9 = vld [vmem:[%s927_s1] sm:$0xff]  ;;  %s331_s25 = sshll.u32 %s205_s5, 4  ;;  %s317_s24 = scalar_lea.sflag [#allocation4], %s842_s11  ;;  %s867_s25 = int_to_ptr.vmem [resolvable:$true] %s331_s25 }
  0x43   : > { %v214_v10 = vld [vmem:[%s928_s2] sm:$0xff]  ;;  %456 = vmatprep.subr.bf16.mxu0 %v455_v4  ;;  %452 = vmatprep.mubr.msk.f32.mxu0 %vm226_vm0, %v212_v9  ;;  %v463_v11 = vpack.c.bf16 %v211_v8, %v210_v6  ;;  %v215_v12 = vld [vmem:[%s928_s2 + $0x8] sm:$0xff]  ;;  %s328_s21 = sadd.s32 %s669_s15, %s470_s10  ;;  %s587_s26 = scalar_lea.vmem %s867_s25, 256 }
  0x44   : > { %458 = vmatpush3.bf16.msra.mxu0 %v455_v4  ;;  %218 = vperm.xlu0 %556, %v214_v10   ;;  %v213_v13 = vld [vmem:[%s927_s1 + $0x8] sm:$0xff]  ;;  %s429_s9 = sshll.u32 %s328_s21, 7  ;;  %p588_p8 = scmp.ne.s32.totalorder %s867_s25, %s587_s26 }
  0x45   : > { %460 = vmatprep.subr.bf16.mxu0 %v459_v7  ;;  %s872_s20 = scalar_lea.hbm %s929_s3, %s429_s9  ;;  %p936_p9 = scmp.ne.s32.totalorder %s933_s28, 0 }
  0x46   : > { %s692_s27 = smov [#allocation5]  }
  0x47   : > { %p589_p12 = pnand %p588_p8, %p936_p9  ;;  %s591_s29 = sshll.u32 %s692_s27, 4  ;;  %s592_s29 = int_to_ptr.vmem [resolvable:$false] %s591_s29 }
  0x48   : > { %462 = vmatpush3.bf16.msra.mxu0 %v459_v7  ;;  %223 = vperm.xlu0 %556, %v215_v12   ;;  %s593_s7 = scalar_lea.vmem %s592_s29, 512  ;;  %p594_p11 = scmp.lt.s32.totalorder %s867_s25, %s592_s29 }
  0x49   : > { %464 = vmatprep.subr.bf16.mxu0 %v463_v11  ;;  %p590_p0 = pneg %p589_p12  ;;  %p595_p13 = scmp.lt.s32.totalorder %s593_s7, %s587_s26 }
  0x4b   : > { %p596_p1 = por %p595_p13, %p594_p11 }
  0x4c   : > { %466 = vmatpush3.bf16.msra.mxu0 %v463_v11 }
  0x4d   : > { %p597_p3 = pnand %p596_p1, %p590_p0 }
  0x4f   : > { %453 = vmatmul.mubr.msk.f32.vlgmr.msra.gmra.mrb[0].mxu0 %vm226_vm0, %v213_v13 }
  0xc3   : > { %v219_v14 = vpop.permute.xlu0 %218 }
  0xc7   : > { %v224_v15 = vpop.permute.xlu0 %223 }
 0x122   : > { %v454_v16 = vpop.f32.mrb[0].mxu0 }
 0x123   : > { %v305_v17 = vadd.f32 %v454_v16, %v224_v15  ;;  %v299_v18 = vpop.f32.mrb[1].mxu0 }
 0x124   : > { %v300_v19 = vadd.f32 %v299_v18, %v219_v14 }
 0x125   : > { %vm309_vm1 = vcmp.ge.f32.partialorder %v305_v17, 0.0  ;;  %v311_v20 = vmul.f32 0.2, %v305_v17 }
 0x126   : > { %vm308_vm2 = vcmp.ge.f32.partialorder %v300_v19, 0.0  ;;  %v310_v21 = vmul.f32 0.2, %v300_v19 }
 0x127   : > { %v313_v22 = vsel %vm309_vm1, %v305_v17, %v311_v20 }
 0x128   : > { %315 = vst [vmem:[%s205_s5 + $0x8] sm:$0xff] %v313_v22  ;;  %v312_v23 = vsel %vm308_vm2, %v300_v19, %v310_v21 }
 0x129   : > { %314 = vst [vmem:[%s205_s5] sm:$0xff] %v312_v23 }
 0x12a   : > { %600 = shalt.err (!%p597_p3)
}
 0x12b   : > { %s601_s30 = scalar_lea.hbm %s872_s20, 256  ;;  %s605_s21 = scalar_lea.hbm %s929_s3, 4608 }
 0x12c   : > { %p602_p5 = scmp.ne.s32.totalorder %s872_s20, %s601_s30  ;;  %p606_p2 = scmp.lt.u32.totalorder %s872_s20, %s929_s3 }
 0x12d   : > { %p607_p4 = scmp.lt.u32.totalorder %s605_s21, %s601_s30  ;;  %p609_p8 = scmp.lt.u32.totalorder %s601_s30, %s872_s20 }
 0x12e   : > { %p603_p6 = pnand %p602_p5, %p936_p9 }
 0x12f   : > { %p608_p10 = por %p607_p4, %p606_p2 }
 0x130   : > { %p604_p7 = pneg %p603_p6 }
 0x131   : > { %p610_p12 = por %p609_p8, %p608_p10 }
 0x133   : > { %p611_p0 = pnand %p610_p12, %p604_p7 }
 0x135   : > { %614 = shalt.err (!%p611_p0)
}
 0x136   : > { %s693_s15 = smov 128   ;;  %s694_s16 = smov 1152  }
 0x137   : > { %s695_s26 = smov 8  }
 0x138   : > { %473 = dma.vmem_to_hbm [thread:$0]  (%p936_p9), %s867_s25, 256, %s872_s20, %s317_s24, %s693_s15, %s694_s16, %s695_s26  }
 0x139 PF: > { %p484_p11 = scmp.ge.s32.totalorder %s685_s19, 2  ;;  %s346_s27 = sand.u32 1, %s657_s12  }
 0x13a   : > { %p937_p13 = scmp.ne.s32.totalorder %s934_s4, 0  ;;  %s347_s29 = scalar_lea.sflag [#allocation4], %s346_s27 }
 0x13c   : > { %p480_p1 = pnand %p484_p11, %p937_p13 }
 0x13e   : > { %652 = dma.done.wait (!%p480_p1), %s347_s29, 256  }
 0x13f   : > { %654 = vsyncadd (!%p480_p1), %s347_s29, 4294967040  ;;  %s19_s19 = sadd.s32 1, %s685_s19   ;;  %s938_s12 = smov %s661_s13 }
 0x140   : > { %p16_p3 = scmp.ge.s32.totalorder %s19_s19, 20   ;;  %s939_s13 = smov %s665_s14 }
 0x141   : > { %s940_s14 = smov %s794_s6  ;;  %s941_s15 = smov %s677_s17 }
 0x142   : > { %s942_s16 = smov %s681_s18  ;;  %s943_s17 = smov %s946_s22 }
 0x143   : > { %s944_s18 = smov %s950_s23  ;;  %18 = sbr.rel (!%p16_p3) target bundleno = 7 (0x7), region = 77 }
 0x14a   :  { %352 = vsyncpa [#allocation3], 1 }
 0x14b   :  { %354 = vsyncpa [#allocation3 + $0x1], 1 }
 0x14c   :  { %355 = vsyncpa [#allocation4], 1 }
 0x14d   :  { %357 = vsyncpa [#allocation4 + $0x1], 1 }

</bundles_post_ra>
